<compile_context>
chip_gen: v6e
topology: v6e:2x2x1
jax: 0.10.0
libtpu: 0.0.40
codegen_flags: <defaults>
</compile_context>

<pallas_src>
import functools
import math

import jax
import jax.numpy as jnp
from jax.experimental import pallas as pl
from jax.experimental.pallas import tpu as pltpu


_INV_SQRT2 = 1.0 / 1.41421  # matches the reference's erf(x / 1.41421)


# ----------------------------- Pallas kernel -------------------------------

def _linear_kernel(x_ref, w_ref, b_ref, o_ref, acc_ref, *, act):
    """Tiled y = act(x @ W + b).

    Grid = (M/tm, N/tn, K/tk); the output tile stays resident across the K axis
    (same block index), accumulated in an f32 VMEM scratch.
    """
    k = pl.program_id(2)

    @pl.when(k == 0)
    def _init():
        acc_ref[...] = jnp.zeros_like(acc_ref)

    acc_ref[...] += jnp.dot(
        x_ref[...], w_ref[...], preferred_element_type=jnp.float32)

    @pl.when(k == pl.num_programs(2) - 1)
    def _epilogue():
        # Epilogue in f32 vregs (VPU/EUP work hidden under the MXU); cast only
        # at the final store.
        y = acc_ref[...] + b_ref[...].astype(jnp.float32)
        if act == "gelu":
            y = y * 0.5 * (1.0 + jax.lax.erf(y * _INV_SQRT2))
        o_ref[...] = y.astype(o_ref.dtype)


# ----------------------------- kernel wrapper -------------------------------

def _choose_tile(dim, max_tile, align):
    """Largest tile <= max_tile that divides `dim` and is a multiple of `align`.

    Falls back to the full dim (always a legal block shape) for small / odd dims.
    """
    if dim <= max_tile:
        return dim
    t = (max_tile // align) * align
    while t >= align:
        if dim % t == 0:
            return t
        t -= align
    return dim


def linear(x, w, b, act=None, *, tm_max=512, tn_max=512, tk_max=512):
    """x: [..., K], w: [K, N], b: [N] -> [..., N]  (y = x @ W + b, optional GELU).

    Weights are stored [in, out] so this equals PyTorch's x @ W.T + b.
    """
    lead = x.shape[:-1]
    K = x.shape[-1]
    N = w.shape[1]
    M = 1
    for d in lead:
        M *= d
    x2 = x.reshape(M, K)
    b2 = b.reshape(1, N)

    tm = _choose_tile(M, tm_max, 8)
    tn = _choose_tile(N, tn_max, 128)
    tk = _choose_tile(K, tk_max, 128)
    grid = (M // tm, N // tn, K // tk)

    # VMEM budget: double-buffered x/w/b/out tiles + the f32 accumulator.
    itemsize = x.dtype.itemsize
    est_bytes = (2 * (tm * tk + tk * tn + tn + tm * tn) * itemsize
                 + tm * tn * 4)
    # Explicit scoped-VMEM limit with headroom; capped at v7x's 64 MiB ceiling.
    vmem_limit = int(min(max(2 * est_bytes, 32 * 1024 * 1024), 64 * 1024 * 1024))

    out = pl.pallas_call(
        functools.partial(_linear_kernel, act=act),
        out_shape=jax.ShapeDtypeStruct((M, N), x.dtype),
        grid=grid,
        in_specs=[
            pl.BlockSpec((tm, tk), lambda i, j, k: (i, k)),
            pl.BlockSpec((tk, tn), lambda i, j, k: (k, j)),
            pl.BlockSpec((1, tn), lambda i, j, k: (0, j)),
        ],
        out_specs=pl.BlockSpec((tm, tn), lambda i, j, k: (i, j)),
        scratch_shapes=[pltpu.VMEM((tm, tn), jnp.float32)],
        compiler_params=pltpu.CompilerParams(
            dimension_semantics=("parallel", "parallel", "arbitrary"),
            vmem_limit_bytes=vmem_limit),
    )(x2, w, b2)
    return out.reshape(*lead, N)


# ----------------------------- model pieces ---------------------------------

def positionwise_ff(params, x):
    """Positionwise_ff.forward: fc_2(dropout(gelu(fc_1(x)))); dropout = identity."""
    h = linear(x, params["w1"], params["b1"], act="gelu")
    return linear(h, params["w2"], params["b2"])


def init_params(key, hidden_size, ff_dim, std):
    k1, k2 = jax.random.split(key)
    # Stored as [in, out] so the kernel computes x @ W + b (== PyTorch x @ W.T + b).
    w1 = jax.random.normal(k1, (hidden_size, ff_dim), jnp.float32) * std
    b1 = jnp.zeros((ff_dim,), jnp.float32)
    w2 = jax.random.normal(k2, (ff_dim, hidden_size), jnp.float32) * std
    b2 = jnp.zeros((hidden_size,), jnp.float32)
    return dict(w1=w1, b1=b1, w2=w2, b2=b2)


# --------------------------------- main --------------------------------------

if __name__ == "__main__":
    # Lane-dense small config (multiples of 128 so blocks map cleanly onto
    # (8,128) vregs with no masked partial stores).
    cfg = dict(hidden_size=128, ff_dim=256, dropout_prob=0.0, act_fn="gelu",
               initializer_range=0.02)
    B, S = 2, 64

    key = jax.random.PRNGKey(0)
    pkey, xkey = jax.random.split(key)
    params = init_params(pkey, cfg["hidden_size"], cfg["ff_dim"],
                         cfg["initializer_range"])
    x = jax.random.normal(xkey, (B, S, cfg["hidden_size"]), jnp.float32)

    fwd = jax.jit(positionwise_ff)
    out = fwd(params, x)
    jax.block_until_ready(out)
    assert out.shape == (B, S, cfg["hidden_size"])

    # Pure-JAX reference check (same math as the PyTorch module, eval mode).
    h_ref = x @ params["w1"] + params["b1"]
    h_ref = h_ref * 0.5 * (1.0 + jax.lax.erf(h_ref / 1.41421))
    y_ref = h_ref @ params["w2"] + params["b2"]
    assert jnp.allclose(out, y_ref, atol=1e-4, rtol=1e-4), "mismatch vs reference"

    print("KERNEL_OK")
</pallas_src>

<mosaic_0001>
module attributes {stable_mosaic.version = 11 : i64} {
  func.func @_linear_kernel(%arg0: i32, %arg1: i32, %arg2: i32, %arg3: memref<128x256xf32, #tpu.memory_space<vmem>>, %arg4: memref<256x128xf32, #tpu.memory_space<vmem>>, %arg5: memref<1x128xf32, #tpu.memory_space<vmem>>, %arg6: memref<128x128xf32, #tpu.memory_space<vmem>>, %arg7: memref<128x128xf32, #tpu.memory_space<vmem>>) attributes {dimension_semantics = [#tpu.dimension_semantics<parallel>, #tpu.dimension_semantics<parallel>, #tpu.dimension_semantics<arbitrary>], iteration_bounds = array<i64: 1, 1, 1>, scalar_prefetch = 0 : i64, scratch_operands = 1 : i64, tpu.core_type = #tpu.core_type<tc>, window_params = [{transform_indices = @transform_0, window_bounds = array<i64: 128, 256>}, {transform_indices = @transform_1, window_bounds = array<i64: 256, 128>}, {transform_indices = @transform_2, window_bounds = array<i64: 1, 128>}, {transform_indices = @transform_3, window_bounds = array<i64: 128, 128>}]} {
    %c0_i32 = arith.constant 0 : i32
    %0 = arith.cmpi eq, %arg2, %c0_i32 : i32
    %1 = arith.extui %0 : i1 to i32
    %c0_i32_0 = arith.constant 0 : i32
    %2 = arith.cmpi ne, %1, %c0_i32_0 : i32
    scf.if %2 {
      %cst_10 = arith.constant 0.000000e+00 : f32
      %12 = vector.broadcast %cst_10 : f32 to vector<128x128xf32>
      %c0_11 = arith.constant 0 : index
      %c0_12 = arith.constant 0 : index
      %13 = vector.load %arg7[%c0_11, %c0_12] : memref<128x128xf32, #tpu.memory_space<vmem>>, vector<128x128xf32>
      tpu.vector_store %arg7[%c0_11, %c0_12], %12 {strides = array<i32>} : memref<128x128xf32, #tpu.memory_space<vmem>>, vector<128x128xf32>,
    } else {
    }
    %c0 = arith.constant 0 : index
    %c0_1 = arith.constant 0 : index
    %3 = vector.load %arg7[%c0, %c0_1] : memref<128x128xf32, #tpu.memory_space<vmem>>, vector<128x128xf32>
    %c0_2 = arith.constant 0 : index
    %c0_3 = arith.constant 0 : index
    %4 = vector.load %arg3[%c0_2, %c0_3] : memref<128x256xf32, #tpu.memory_space<vmem>>, vector<128x256xf32>
    %c0_4 = arith.constant 0 : index
    %c0_5 = arith.constant 0 : index
    %5 = vector.load %arg4[%c0_4, %c0_5] : memref<256x128xf32, #tpu.memory_space<vmem>>, vector<256x128xf32>
    %cst = arith.constant dense<0.000000e+00> : vector<128x128xf32>
    %6 = tpu.matmul %4, %5, %cst {dimension_numbers = #tpu.dot_dimension_numbers<[1], [0], [0], [1], [0, 0, 1, 1], [], []>} : vector<128x256xf32>, vector<256x128xf32>, vector<128x128xf32> -> vector<128x128xf32>
    %7 = arith.addf %3, %6 : vector<128x128xf32>
    %c0_6 = arith.constant 0 : index
    %c0_7 = arith.constant 0 : index
    %8 = vector.load %arg7[%c0_6, %c0_7] : memref<128x128xf32, #tpu.memory_space<vmem>>, vector<128x128xf32>
    tpu.vector_store %arg7[%c0_6, %c0_7], %7 {strides = array<i32>} : memref<128x128xf32, #tpu.memory_space<vmem>>, vector<128x128xf32>,
    %c0_i32_8 = arith.constant 0 : i32
    %9 = arith.cmpi eq, %arg2, %c0_i32_8 : i32
    %10 = arith.extui %9 : i1 to i32
    %c0_i32_9 = arith.constant 0 : i32
    %11 = arith.cmpi ne, %10, %c0_i32_9 : i32
    scf.if %11 {
      %c0_10 = arith.constant 0 : index
      %c0_11 = arith.constant 0 : index
      %12 = vector.load %arg7[%c0_10, %c0_11] : memref<128x128xf32, #tpu.memory_space<vmem>>, vector<128x128xf32>
      %c0_12 = arith.constant 0 : index
      %c0_13 = arith.constant 0 : index
      %13 = vector.load %arg5[%c0_12, %c0_13] : memref<1x128xf32, #tpu.memory_space<vmem>>, vector<1x128xf32>
      %14 = vector.broadcast %13 : vector<1x128xf32> to vector<128x128xf32>
      %15 = arith.addf %12, %14 : vector<128x128xf32>
      %c0_14 = arith.constant 0 : index
      %c0_15 = arith.constant 0 : index
      %16 = vector.load %arg6[%c0_14, %c0_15] : memref<128x128xf32, #tpu.memory_space<vmem>>, vector<128x128xf32>
      tpu.vector_store %arg6[%c0_14, %c0_15], %15 {strides = array<i32>} : memref<128x128xf32, #tpu.memory_space<vmem>>, vector<128x128xf32>,
    } else {
    }
    return
  }
  func.func @transform_0(%arg0: i32, %arg1: i32, %arg2: i32) -> (i32, i32) {
    %c0_i32 = arith.constant 0 : i32
    return %arg0, %arg2 : i32, i32
  }
  func.func @transform_1(%arg0: i32, %arg1: i32, %arg2: i32) -> (i32, i32) {
    %c0_i32 = arith.constant 0 : i32
    return %arg2, %arg1 : i32, i32
  }
  func.func @transform_2(%arg0: i32, %arg1: i32, %arg2: i32) -> (i32, i32) {
    %c0_i32 = arith.constant 0 : i32
    %c0_i32_0 = arith.constant 0 : i32
    return %c0_i32, %arg1 : i32, i32
  }
  func.func @transform_3(%arg0: i32, %arg1: i32, %arg2: i32) -> (i32, i32) {
    %c0_i32 = arith.constant 0 : i32
    return %arg0, %arg1 : i32, i32
  }
}

module attributes {stable_mosaic.version = 11 : i64} {
  func.func @_linear_kernel(%arg0: i32, %arg1: i32, %arg2: i32, %arg3: memref<128x128xf32, #tpu.memory_space<vmem>>, %arg4: memref<128x256xf32, #tpu.memory_space<vmem>>, %arg5: memref<1x256xf32, #tpu.memory_space<vmem>>, %arg6: memref<128x256xf32, #tpu.memory_space<vmem>>, %arg7: memref<128x256xf32, #tpu.memory_space<vmem>>) attributes {dimension_semantics = [#tpu.dimension_semantics<parallel>, #tpu.dimension_semantics<parallel>, #tpu.dimension_semantics<arbitrary>], iteration_bounds = array<i64: 1, 1, 1>, scalar_prefetch = 0 : i64, scratch_operands = 1 : i64, tpu.core_type = #tpu.core_type<tc>, window_params = [{transform_indices = @transform_0, window_bounds = array<i64: 128, 128>}, {transform_indices = @transform_1, window_bounds = array<i64: 128, 256>}, {transform_indices = @transform_2, window_bounds = array<i64: 1, 256>}, {transform_indices = @transform_3, window_bounds = array<i64: 128, 256>}]} {
    %c0_i32 = arith.constant 0 : i32
    %0 = arith.cmpi eq, %arg2, %c0_i32 : i32
    %1 = arith.extui %0 : i1 to i32
    %c0_i32_0 = arith.constant 0 : i32
    %2 = arith.cmpi ne, %1, %c0_i32_0 : i32
    scf.if %2 {
      %cst_10 = arith.constant 0.000000e+00 : f32
      %12 = vector.broadcast %cst_10 : f32 to vector<128x256xf32>
      %c0_11 = arith.constant 0 : index
      %c0_12 = arith.constant 0 : index
      %13 = vector.load %arg7[%c0_11, %c0_12] : memref<128x256xf32, #tpu.memory_space<vmem>>, vector<128x256xf32>
      tpu.vector_store %arg7[%c0_11, %c0_12], %12 {strides = array<i32>} : memref<128x256xf32, #tpu.memory_space<vmem>>, vector<128x256xf32>,
    } else {
    }
    %c0 = arith.constant 0 : index
    %c0_1 = arith.constant 0 : index
    %3 = vector.load %arg7[%c0, %c0_1] : memref<128x256xf32, #tpu.memory_space<vmem>>, vector<128x256xf32>
    %c0_2 = arith.constant 0 : index
    %c0_3 = arith.constant 0 : index
    %4 = vector.load %arg3[%c0_2, %c0_3] : memref<128x128xf32, #tpu.memory_space<vmem>>, vector<128x128xf32>
    %c0_4 = arith.constant 0 : index
    %c0_5 = arith.constant 0 : index
    %5 = vector.load %arg4[%c0_4, %c0_5] : memref<128x256xf32, #tpu.memory_space<vmem>>, vector<128x256xf32>
    %cst = arith.constant dense<0.000000e+00> : vector<128x256xf32>
    %6 = tpu.matmul %4, %5, %cst {dimension_numbers = #tpu.dot_dimension_numbers<[1], [0], [0], [1], [0, 0, 1, 1], [], []>} : vector<128x128xf32>, vector<128x256xf32>, vector<128x256xf32> -> vector<128x256xf32>
    %7 = arith.addf %3, %6 : vector<128x256xf32>
    %c0_6 = arith.constant 0 : index
    %c0_7 = arith.constant 0 : index
    %8 = vector.load %arg7[%c0_6, %c0_7] : memref<128x256xf32, #tpu.memory_space<vmem>>, vector<128x256xf32>
    tpu.vector_store %arg7[%c0_6, %c0_7], %7 {strides = array<i32>} : memref<128x256xf32, #tpu.memory_space<vmem>>, vector<128x256xf32>,
    %c0_i32_8 = arith.constant 0 : i32
    %9 = arith.cmpi eq, %arg2, %c0_i32_8 : i32
    %10 = arith.extui %9 : i1 to i32
    %c0_i32_9 = arith.constant 0 : i32
    %11 = arith.cmpi ne, %10, %c0_i32_9 : i32
    scf.if %11 {
      %c0_10 = arith.constant 0 : index
      %c0_11 = arith.constant 0 : index
      %12 = vector.load %arg7[%c0_10, %c0_11] : memref<128x256xf32, #tpu.memory_space<vmem>>, vector<128x256xf32>
      %c0_12 = arith.constant 0 : index
      %c0_13 = arith.constant 0 : index
      %13 = vector.load %arg5[%c0_12, %c0_13] : memref<1x256xf32, #tpu.memory_space<vmem>>, vector<1x256xf32>
      %14 = vector.broadcast %13 : vector<1x256xf32> to vector<128x256xf32>
      %15 = arith.addf %12, %14 : vector<128x256xf32>
      %cst_14 = arith.constant 5.000000e-01 : f32
      %16 = vector.broadcast %cst_14 : f32 to vector<128x256xf32>
      %17 = arith.mulf %15, %16 : vector<128x256xf32>
      %cst_15 = arith.constant 0.707108557 : f32
      %18 = vector.broadcast %cst_15 : f32 to vector<128x256xf32>
      %19 = arith.mulf %15, %18 : vector<128x256xf32>
      %20 = math.erf %19 : vector<128x256xf32>
      %cst_16 = arith.constant 1.000000e+00 : f32
      %21 = vector.broadcast %cst_16 : f32 to vector<128x256xf32>
      %22 = arith.addf %21, %20 : vector<128x256xf32>
      %23 = arith.mulf %17, %22 : vector<128x256xf32>
      %c0_17 = arith.constant 0 : index
      %c0_18 = arith.constant 0 : index
      %24 = vector.load %arg6[%c0_17, %c0_18] : memref<128x256xf32, #tpu.memory_space<vmem>>, vector<128x256xf32>
      tpu.vector_store %arg6[%c0_17, %c0_18], %23 {strides = array<i32>} : memref<128x256xf32, #tpu.memory_space<vmem>>, vector<128x256xf32>,
    } else {
    }
    return
  }
  func.func @transform_0(%arg0: i32, %arg1: i32, %arg2: i32) -> (i32, i32) {
    %c0_i32 = arith.constant 0 : i32
    return %arg0, %arg2 : i32, i32
  }
  func.func @transform_1(%arg0: i32, %arg1: i32, %arg2: i32) -> (i32, i32) {
    %c0_i32 = arith.constant 0 : i32
    return %arg2, %arg1 : i32, i32
  }
  func.func @transform_2(%arg0: i32, %arg1: i32, %arg2: i32) -> (i32, i32) {
    %c0_i32 = arith.constant 0 : i32
    %c0_i32_0 = arith.constant 0 : i32
    return %c0_i32, %arg1 : i32, i32
  }
  func.func @transform_3(%arg0: i32, %arg1: i32, %arg2: i32) -> (i32, i32) {
    %c0_i32 = arith.constant 0 : i32
    return %arg0, %arg1 : i32, i32
  }
}

</mosaic_0001>

<bundles_post_ra>
// kernel: positionwise_ff.3
= control target key start
LH: loop header
LB: loop body
LE: loop exit
PB: predicated region body
PF: predicated region fallthrough
CT: control target
= control target key end

     0   :  { %s743_s0 = inlined_call_operand.vmem [shape: f32[128,256], index: 0, kind: input, shape index: {}]   ;;  %s744_s1 = inlined_call_operand.vmem [shape: f32[256,128], index: 1, kind: input, shape index: {}]   ;;  %s745_s2 = inlined_call_operand.vmem [shape: f32[1,128], index: 2, kind: input, shape index: {}]   ;;  %s746_s3 = inlined_call_operand.hbm [shape: f32[128,128], index: 3, kind: output, shape index: {}]  }
   0x1   :  { %v114_v0 = vld [vmem:[%s744_s1 + $0xf8] sm:$0xff]  ;;  %v113_v2 = vld [vmem:[%s744_s1 + $0xf0] sm:$0xff]  ;;  %v112_v4 = vld [vmem:[%s744_s1 + $0xe8] sm:$0xff] }
   0x2   :  { %v98_v1 = vld [vmem:[%s744_s1 + $0x78] sm:$0xff]  ;;  %367 = vmatprep.subr.mxu0 %v114_v0  ;;  %447 = vmatprep.subr.mxu1 %v114_v0  ;;  %v97_v3 = vld [vmem:[%s744_s1 + $0x70] sm:$0xff]  ;;  %v96_v5 = vld [vmem:[%s744_s1 + $0x68] sm:$0xff] }
   0x3   :  { %368 = vmatpush3.msra.mxu0 %v98_v1  ;;  %463 = vmatpush3.msra.mxu1 %v98_v1  ;;  %v111_v6 = vld [vmem:[%s744_s1 + $0xe0] sm:$0xff]  ;;  %v110_v8 = vld [vmem:[%s744_s1 + $0xd8] sm:$0xff]  ;;  %v109_v10 = vld [vmem:[%s744_s1 + $0xd0] sm:$0xff] }
   0x4   :  { %369 = vmatprep.subr.mxu0 %v113_v2  ;;  %448 = vmatprep.subr.mxu1 %v113_v2  ;;  %v95_v7 = vld [vmem:[%s744_s1 + $0x60] sm:$0xff]  ;;  %v94_v9 = vld [vmem:[%s744_s1 + $0x58] sm:$0xff]  ;;  %v93_v11 = vld [vmem:[%s744_s1 + $0x50] sm:$0xff] }
   0x5   :  { %370 = vmatpush3.msra.mxu0 %v97_v3  ;;  %464 = vmatpush3.msra.mxu1 %v97_v3  ;;  %v108_v12 = vld [vmem:[%s744_s1 + $0xc8] sm:$0xff]  ;;  %v107_v14 = vld [vmem:[%s744_s1 + $0xc0] sm:$0xff]  ;;  %v106_v16 = vld [vmem:[%s744_s1 + $0xb8] sm:$0xff] }
   0x6   :  { %371 = vmatprep.subr.mxu0 %v112_v4  ;;  %449 = vmatprep.subr.mxu1 %v112_v4  ;;  %v92_v13 = vld [vmem:[%s744_s1 + $0x48] sm:$0xff]  ;;  %v91_v15 = vld [vmem:[%s744_s1 + $0x40] sm:$0xff]  ;;  %v90_v17 = vld [vmem:[%s744_s1 + $0x38] sm:$0xff] }
   0x7   :  { %372 = vmatpush3.msra.mxu0 %v96_v5  ;;  %465 = vmatpush3.msra.mxu1 %v96_v5  ;;  %v105_v18 = vld [vmem:[%s744_s1 + $0xb0] sm:$0xff]  ;;  %v104_v20 = vld [vmem:[%s744_s1 + $0xa8] sm:$0xff]  ;;  %v103_v22 = vld [vmem:[%s744_s1 + $0xa0] sm:$0xff] }
   0x8   :  { %373 = vmatprep.subr.mxu0 %v111_v6  ;;  %450 = vmatprep.subr.mxu1 %v111_v6  ;;  %v89_v19 = vld [vmem:[%s744_s1 + $0x30] sm:$0xff]  ;;  %v88_v21 = vld [vmem:[%s744_s1 + $0x28] sm:$0xff]  ;;  %v87_v23 = vld [vmem:[%s744_s1 + $0x20] sm:$0xff] }
   0x9   :  { %374 = vmatpush3.msra.mxu0 %v95_v7  ;;  %466 = vmatpush3.msra.mxu1 %v95_v7 }
   0xa   :  { %375 = vmatprep.subr.mxu0 %v110_v8  ;;  %451 = vmatprep.subr.mxu1 %v110_v8 }
   0xb   :  { %376 = vmatpush3.msra.mxu0 %v94_v9  ;;  %467 = vmatpush3.msra.mxu1 %v94_v9 }
   0xc   :  { %377 = vmatprep.subr.mxu0 %v109_v10  ;;  %452 = vmatprep.subr.mxu1 %v109_v10 }
   0xd   :  { %378 = vmatpush3.msra.mxu0 %v93_v11  ;;  %468 = vmatpush3.msra.mxu1 %v93_v11 }
   0xe   :  { %379 = vmatprep.subr.mxu0 %v108_v12  ;;  %453 = vmatprep.subr.mxu1 %v108_v12 }
   0xf   :  { %380 = vmatpush3.msra.mxu0 %v92_v13  ;;  %469 = vmatpush3.msra.mxu1 %v92_v13 }
  0x10   :  { %381 = vmatprep.subr.mxu0 %v107_v14  ;;  %454 = vmatprep.subr.mxu1 %v107_v14 }
  0x11   :  { %382 = vmatpush3.msra.mxu0 %v91_v15  ;;  %470 = vmatpush3.msra.mxu1 %v91_v15 }
  0x12   :  { %383 = vmatprep.subr.mxu0 %v106_v16  ;;  %455 = vmatprep.subr.mxu1 %v106_v16 }
  0x13   :  { %384 = vmatpush3.msra.mxu0 %v90_v17  ;;  %471 = vmatpush3.msra.mxu1 %v90_v17 }
  0x14   :  { %385 = vmatprep.subr.mxu0 %v105_v18  ;;  %456 = vmatprep.subr.mxu1 %v105_v18 }
  0x15   :  { %386 = vmatpush3.msra.mxu0 %v89_v19  ;;  %472 = vmatpush3.msra.mxu1 %v89_v19 }
  0x16   :  { %387 = vmatprep.subr.mxu0 %v104_v20  ;;  %457 = vmatprep.subr.mxu1 %v104_v20 }
  0x17   :  { %8 = vsyncpa [#allocation4], 0  ;;  %388 = vmatpush3.msra.mxu0 %v88_v21  ;;  %473 = vmatpush3.msra.mxu1 %v88_v21  ;;  %v102_v24 = vld [vmem:[%s744_s1 + $0x98] sm:$0xff]  ;;  %v101_v26 = vld [vmem:[%s744_s1 + $0x90] sm:$0xff] }
  0x18   :  { %389 = vmatprep.subr.mxu0 %v103_v22  ;;  %458 = vmatprep.subr.mxu1 %v103_v22  ;;  %v86_v25 = vld [vmem:[%s744_s1 + $0x18] sm:$0xff]  ;;  %v85_v27 = vld [vmem:[%s744_s1 + $0x10] sm:$0xff]  ;;  %v100_v28 = vld [vmem:[%s744_s1 + $0x88] sm:$0xff] }
  0x19   :  { %390 = vmatpush3.msra.mxu0 %v87_v23  ;;  %474 = vmatpush3.msra.mxu1 %v87_v23  ;;  %v84_v29 = vld [vmem:[%s744_s1 + $0x8] sm:$0xff]  ;;  %v99_v30 = vld [vmem:[%s744_s1 + $0x80] sm:$0xff]  ;;  %v54_v36 = vld [vmem:[%s743_s0 + $0x18] sm:$0xff] }
  0x1a   :  { %391 = vmatprep.subr.mxu0 %v102_v24  ;;  %459 = vmatprep.subr.mxu1 %v102_v24  ;;  %v83_v31 = vld [vmem:[%s744_s1] sm:$0xff]  ;;  %v52_v32 = vld [vmem:[%s743_s0 + $0x8] sm:$0xff]  ;;  %v70_v37 = vld [vmem:[%s743_s0 + $0x98] sm:$0xff] }
  0x1b   :  { %392 = vmatpush3.msra.mxu0 %v86_v25  ;;  %475 = vmatpush3.msra.mxu1 %v86_v25  ;;  %v68_v33 = vld [vmem:[%s743_s0 + $0x88] sm:$0xff]  ;;  %v51_v34 = vld [vmem:[%s743_s0] sm:$0xff]  ;;  %v53_v38 = vld [vmem:[%s743_s0 + $0x10] sm:$0xff] }
  0x1c   :  { %393 = vmatprep.subr.mxu0 %v101_v26  ;;  %460 = vmatprep.subr.mxu1 %v101_v26  ;;  %v67_v35 = vld [vmem:[%s743_s0 + $0x80] sm:$0xff]  ;;  %v69_v39 = vld [vmem:[%s743_s0 + $0x90] sm:$0xff]  ;;  %v56_v40 = vld [vmem:[%s743_s0 + $0x28] sm:$0xff] }
  0x1d   :  { %394 = vmatpush3.msra.mxu0 %v85_v27  ;;  %476 = vmatpush3.msra.mxu1 %v85_v27  ;;  %v72_v41 = vld [vmem:[%s743_s0 + $0xa8] sm:$0xff]  ;;  %v55_v42 = vld [vmem:[%s743_s0 + $0x20] sm:$0xff]  ;;  %v58_v44 = vld [vmem:[%s743_s0 + $0x38] sm:$0xff] }
  0x1e   :  { %395 = vmatprep.subr.mxu0 %v100_v28  ;;  %461 = vmatprep.subr.mxu1 %v100_v28  ;;  %v71_v43 = vld [vmem:[%s743_s0 + $0xa0] sm:$0xff]  ;;  %v74_v45 = vld [vmem:[%s743_s0 + $0xb8] sm:$0xff]  ;;  %v57_v46 = vld [vmem:[%s743_s0 + $0x30] sm:$0xff] }
  0x1f   :  { %396 = vmatpush3.msra.mxu0 %v84_v29  ;;  %477 = vmatpush3.msra.mxu1 %v84_v29  ;;  %v73_v47 = vld [vmem:[%s743_s0 + $0xb0] sm:$0xff]  ;;  %v60_v48 = vld [vmem:[%s743_s0 + $0x48] sm:$0xff]  ;;  %v59_v50 = vld [vmem:[%s743_s0 + $0x40] sm:$0xff] }
  0x20   :  { %397 = vmatprep.subr.mxu0 %v99_v30  ;;  %462 = vmatprep.subr.mxu1 %v99_v30  ;;  %v76_v49 = vld [vmem:[%s743_s0 + $0xc8] sm:$0xff]  ;;  %v75_v51 = vld [vmem:[%s743_s0 + $0xc0] sm:$0xff]  ;;  %v62_v52 = vld [vmem:[%s743_s0 + $0x58] sm:$0xff] }
  0x21   :  { %398 = vmatpush3.msra.mxu0 %v83_v31  ;;  %478 = vmatpush3.msra.mxu1 %v83_v31  ;;  %v78_v53 = vld [vmem:[%s743_s0 + $0xd8] sm:$0xff]  ;;  %v61_v54 = vld [vmem:[%s743_s0 + $0x50] sm:$0xff]  ;;  %v64_v56 = vld [vmem:[%s743_s0 + $0x68] sm:$0xff] }
  0x22   :  { %179 = vmatprep.mubr.f32.mxu0 %v52_v32  ;;  %219 = vmatprep.mubr.f32.mxu1 %v68_v33  ;;  %v77_v55 = vld [vmem:[%s743_s0 + $0xd0] sm:$0xff]  ;;  %v80_v57 = vld [vmem:[%s743_s0 + $0xe8] sm:$0xff]  ;;  %v63_v58 = vld [vmem:[%s743_s0 + $0x60] sm:$0xff] }
  0x23   :  { %180 = vmatmul.mubr.f32.vlgmr.msra.gmra.mxu0 %v51_v34  ;;  %220 = vmatmul.mubr.f32.vlgmr.msra.gmra.mxu1 %v67_v35  ;;  %v79_v59 = vld [vmem:[%s743_s0 + $0xe0] sm:$0xff]  ;;  %v66_v60 = vld [vmem:[%s743_s0 + $0x78] sm:$0xff]  ;;  %v65_v62 = vld [vmem:[%s743_s0 + $0x70] sm:$0xff] }
  0x24   :  { %184 = vmatprep.mubr.f32.mxu0 %v54_v36  ;;  %224 = vmatprep.mubr.f32.mxu1 %v70_v37  ;;  %v82_v61 = vld [vmem:[%s743_s0 + $0xf8] sm:$0xff]  ;;  %v81_v63 = vld [vmem:[%s743_s0 + $0xf0] sm:$0xff]  ;;  %v722_v3 = vld [vmem:[%s745_s2] ss:$0 sm:$0xff]  ;;  %s504_s0 = smov [#allocation3]  }
  0x25   :  { %s355_s2 = sshll.u32 %s504_s0, 4  ;;  %s356_s2 = int_to_ptr.vmem [resolvable:$true] %s355_s2 }
  0x26   :  { %s482_s4 = scalar_lea.vmem %s356_s2, 2048  ;;  %p487_p1 = scmp.lt.s32.totalorder %s356_s2, %s356_s2 }
  0x27   :  { %185 = vmatmul.mubr.f32.gmra.mxu0 %v53_v38  ;;  %225 = vmatmul.mubr.f32.gmra.mxu1 %v69_v39  ;;  %p483_p0 = scmp.ne.s32.totalorder %s356_s2, %s482_s4  ;;  %p488_p2 = scmp.lt.s32.totalorder %s482_s4, %s482_s4 }
  0x28   :  { %189 = vmatprep.mubr.f32.mxu0 %v56_v40  ;;  %229 = vmatprep.mubr.f32.mxu1 %v72_v41 }
  0x29   :  { %p489_p3 = por %p488_p2, %p487_p1 }
  0x2b   :  { %190 = vmatmul.mubr.f32.gmra.mxu0 %v55_v42  ;;  %230 = vmatmul.mubr.f32.gmra.mxu1 %v71_v43  ;;  %p490_p4 = pnand %p489_p3, %p483_p0 }
  0x2c   :  { %194 = vmatprep.mubr.f32.mxu0 %v58_v44  ;;  %234 = vmatprep.mubr.f32.mxu1 %v74_v45 }
  0x2f   :  { %195 = vmatmul.mubr.f32.gmra.mxu0 %v57_v46  ;;  %235 = vmatmul.mubr.f32.gmra.mxu1 %v73_v47 }
  0x30   :  { %199 = vmatprep.mubr.f32.mxu0 %v60_v48  ;;  %239 = vmatprep.mubr.f32.mxu1 %v76_v49 }
  0x33   :  { %200 = vmatmul.mubr.f32.gmra.mxu0 %v59_v50  ;;  %240 = vmatmul.mubr.f32.gmra.mxu1 %v75_v51 }
  0x34   :  { %204 = vmatprep.mubr.f32.mxu0 %v62_v52  ;;  %244 = vmatprep.mubr.f32.mxu1 %v78_v53 }
  0x37   :  { %205 = vmatmul.mubr.f32.gmra.mxu0 %v61_v54  ;;  %245 = vmatmul.mubr.f32.gmra.mxu1 %v77_v55 }
  0x38   :  { %209 = vmatprep.mubr.f32.mxu0 %v64_v56  ;;  %249 = vmatprep.mubr.f32.mxu1 %v80_v57 }
  0x3b   :  { %210 = vmatmul.mubr.f32.gmra.mxu0 %v63_v58  ;;  %250 = vmatmul.mubr.f32.gmra.mxu1 %v79_v59 }
  0x3c   :  { %214 = vmatprep.mubr.f32.mxu0 %v66_v60  ;;  %254 = vmatprep.mubr.f32.mxu1 %v82_v61 }
  0x3f   :  { %215 = vmatmul.mubr.f32.gmra.mxu0 %v65_v62  ;;  %255 = vmatmul.mubr.f32.gmra.mxu1 %v81_v63 }
  0xe3   :  { %v399_v0 = vpop.f32.mrf.mxu0  ;;  %v423_v1 = vpop.f32.mrf.mxu1 }
  0xe5   :  { %v400_v2 = vpop.f32.mrf.mxu0  ;;  %v424_v4 = vpop.f32.mrf.mxu1 }
  0xe6   :  { %v401_v5 = vadd.f32 %v400_v2, %v399_v0  ;;  %v425_v6 = vadd.f32 %v424_v4, %v423_v1 }
  0xe7   :  { %v402_v7 = vpop.f32.mrf.mxu0  ;;  %v426_v8 = vpop.f32.mrf.mxu1 }
  0xe8   :  { %v318_v9 = vadd.f32 %v401_v5, %v722_v3  ;;  %v326_v10 = vadd.f32 %v425_v6, %v722_v3 }
  0xe9   :  { %v403_v11 = vpop.f32.mrf.mxu0  ;;  %v427_v12 = vpop.f32.mrf.mxu1 }
  0xea   :  { %334 = vst [vmem:[#allocation3] sm:$0xff] %v318_v9  ;;  %342 = vst [vmem:[#allocation3 + $0x40] sm:$0xff] %v326_v10  ;;  %v404_v13 = vadd.f32 %v403_v11, %v402_v7  ;;  %v428_v14 = vadd.f32 %v427_v12, %v426_v8 }
  0xeb   :  { %v405_v15 = vpop.f32.mrf.mxu0  ;;  %v429_v16 = vpop.f32.mrf.mxu1 }
  0xec   :  { %v319_v17 = vadd.f32 %v404_v13, %v722_v3  ;;  %v327_v18 = vadd.f32 %v428_v14, %v722_v3 }
  0xed   :  { %v406_v19 = vpop.f32.mrf.mxu0  ;;  %v430_v20 = vpop.f32.mrf.mxu1 }
  0xee   :  { %335 = vst [vmem:[#allocation3 + $0x8] sm:$0xff] %v319_v17  ;;  %343 = vst [vmem:[#allocation3 + $0x48] sm:$0xff] %v327_v18  ;;  %v407_v21 = vadd.f32 %v406_v19, %v405_v15  ;;  %v431_v22 = vadd.f32 %v430_v20, %v429_v16 }
  0xef   :  { %v408_v23 = vpop.f32.mrf.mxu0  ;;  %v432_v24 = vpop.f32.mrf.mxu1 }
  0xf0   :  { %v320_v25 = vadd.f32 %v407_v21, %v722_v3  ;;  %v328_v26 = vadd.f32 %v431_v22, %v722_v3 }
  0xf1   :  { %v409_v27 = vpop.f32.mrf.mxu0  ;;  %v433_v28 = vpop.f32.mrf.mxu1 }
  0xf2   :  { %336 = vst [vmem:[#allocation3 + $0x10] sm:$0xff] %v320_v25  ;;  %344 = vst [vmem:[#allocation3 + $0x50] sm:$0xff] %v328_v26  ;;  %v410_v29 = vadd.f32 %v409_v27, %v408_v23  ;;  %v434_v30 = vadd.f32 %v433_v28, %v432_v24 }
  0xf3   :  { %v411_v31 = vpop.f32.mrf.mxu0  ;;  %v435_v32 = vpop.f32.mrf.mxu1 }
  0xf4   :  { %v321_v33 = vadd.f32 %v410_v29, %v722_v3  ;;  %v329_v34 = vadd.f32 %v434_v30, %v722_v3 }
  0xf5   :  { %v412_v35 = vpop.f32.mrf.mxu0  ;;  %v436_v36 = vpop.f32.mrf.mxu1 }
  0xf6   :  { %337 = vst [vmem:[#allocation3 + $0x18] sm:$0xff] %v321_v33  ;;  %345 = vst [vmem:[#allocation3 + $0x58] sm:$0xff] %v329_v34  ;;  %v413_v37 = vadd.f32 %v412_v35, %v411_v31  ;;  %v437_v38 = vadd.f32 %v436_v36, %v435_v32 }
  0xf7   :  { %v414_v39 = vpop.f32.mrf.mxu0  ;;  %v438_v40 = vpop.f32.mrf.mxu1 }
  0xf8   :  { %v322_v41 = vadd.f32 %v413_v37, %v722_v3  ;;  %v330_v42 = vadd.f32 %v437_v38, %v722_v3 }
  0xf9   :  { %v415_v43 = vpop.f32.mrf.mxu0  ;;  %v439_v44 = vpop.f32.mrf.mxu1 }
  0xfa   :  { %338 = vst [vmem:[#allocation3 + $0x20] sm:$0xff] %v322_v41  ;;  %346 = vst [vmem:[#allocation3 + $0x60] sm:$0xff] %v330_v42  ;;  %v416_v45 = vadd.f32 %v415_v43, %v414_v39  ;;  %v440_v46 = vadd.f32 %v439_v44, %v438_v40 }
  0xfb   :  { %v417_v47 = vpop.f32.mrf.mxu0  ;;  %v441_v48 = vpop.f32.mrf.mxu1 }
  0xfc   :  { %v323_v49 = vadd.f32 %v416_v45, %v722_v3  ;;  %v331_v50 = vadd.f32 %v440_v46, %v722_v3 }
  0xfd   :  { %v418_v51 = vpop.f32.mrf.mxu0  ;;  %v442_v52 = vpop.f32.mrf.mxu1 }
  0xfe   :  { %339 = vst [vmem:[#allocation3 + $0x28] sm:$0xff] %v323_v49  ;;  %347 = vst [vmem:[#allocation3 + $0x68] sm:$0xff] %v331_v50  ;;  %v419_v53 = vadd.f32 %v418_v51, %v417_v47  ;;  %v443_v54 = vadd.f32 %v442_v52, %v441_v48 }
  0xff   :  { %v420_v55 = vpop.f32.mrf.mxu0  ;;  %v444_v56 = vpop.f32.mrf.mxu1 }
 0x100   :  { %v324_v57 = vadd.f32 %v419_v53, %v722_v3  ;;  %v332_v58 = vadd.f32 %v443_v54, %v722_v3 }
 0x101   :  { %v421_v59 = vpop.f32.mrf.mxu0  ;;  %v445_v60 = vpop.f32.mrf.mxu1 }
 0x102   :  { %340 = vst [vmem:[#allocation3 + $0x30] sm:$0xff] %v324_v57  ;;  %348 = vst [vmem:[#allocation3 + $0x70] sm:$0xff] %v332_v58  ;;  %v422_v61 = vadd.f32 %v421_v59, %v420_v55  ;;  %v446_v62 = vadd.f32 %v445_v60, %v444_v56 }
 0x104   :  { %v325_v63 = vadd.f32 %v422_v61, %v722_v3  ;;  %v333_v0 = vadd.f32 %v446_v62, %v722_v3 }
 0x106   :  { %341 = vst [vmem:[#allocation3 + $0x38] sm:$0xff] %v325_v63  ;;  %349 = vst [vmem:[#allocation3 + $0x78] sm:$0xff] %v333_v0 }
 0x107   :  { %493 = shalt.err (!%p490_p4)
}
 0x108   :  { %s505_s5 = smov 128   ;;  %s506_s6 = smov 8  }
 0x109   :  { %361 = dma.vmem_to_hbm [thread:$0]  %s356_s2, 2048, %s746_s3, [#allocation4], %s505_s5, %s505_s5, %s506_s6  }
 0x10a   :  { %502 = dma.done.wait [#allocation4], 2048  }
 0x10b   :  { %503 = vsyncadd [#allocation4], 4294965248 }
 0x10c   :  { %365 = vsyncpa [#allocation4], 1 }

// kernel: positionwise_ff.2
= control target key start
LH: loop header
LB: loop body
LE: loop exit
PB: predicated region body
PF: predicated region fallthrough
CT: control target
= control target key end

     0   :  { %8 = vsyncpa [#allocation4], 0  ;;  %s1079_s0 = inlined_call_operand.hbm [shape: f32[128,128], index: 0, kind: input, shape index: {}]   ;;  %s1080_s1 = inlined_call_operand.hbm [shape: f32[128,256], index: 1, kind: input, shape index: {}]   ;;  %s1081_s2 = inlined_call_operand.vmem [shape: f32[1,256], index: 2, kind: input, shape index: {}]   ;;  %s1082_s3 = inlined_call_operand.vmem [shape: f32[128,256], index: 3, kind: output, shape index: {}]  }
   0x1   :  { %9 = vsyncpa [#allocation6], 0  ;;  %s807_s12 = smov [#allocation3]  }
   0x2   :  { %s15_s13 = sshll.u32 %s807_s12, 4  ;;  %s16_s13 = int_to_ptr.vmem [resolvable:$true] %s15_s13 }
   0x3   :  { %s771_s14 = scalar_lea.vmem %s16_s13, 2048  ;;  %p776_p1 = scmp.lt.s32.totalorder %s16_s13, %s16_s13 }
   0x4   :  { %p772_p0 = scmp.ne.s32.totalorder %s16_s13, %s771_s14  ;;  %p777_p2 = scmp.lt.s32.totalorder %s771_s14, %s771_s14 }
   0x6   :  { %p778_p3 = por %p777_p2, %p776_p1 }
   0x8   :  { %p779_p4 = pnand %p778_p3, %p772_p0 }
   0xa   :  { %782 = shalt.err (!%p779_p4)
}
   0xb   :  { %s808_s15 = smov 128   ;;  %s809_s16 = smov 8  }
   0xc   :  { %21 = dma.hbm_to_vmem [thread:$0]  %s1079_s0, 2048, %s16_s13, [#allocation4], %s808_s15, %s808_s15, %s809_s16  }
   0xd   :  { %s810_s19 = smov [#allocation5]  }
   0xe   :  { %s27_s20 = sshll.u32 %s810_s19, 4  ;;  %s28_s20 = int_to_ptr.vmem [resolvable:$true] %s27_s20 }
   0xf   :  { %s791_s21 = scalar_lea.vmem %s28_s20, 4096  ;;  %p796_p6 = scmp.lt.s32.totalorder %s28_s20, %s28_s20 }
  0x10   :  { %p792_p5 = scmp.ne.s32.totalorder %s28_s20, %s791_s21  ;;  %p797_p7 = scmp.lt.s32.totalorder %s791_s21, %s791_s21 }
  0x12   :  { %p798_p8 = por %p797_p7, %p796_p6 }
  0x14   :  { %p799_p9 = pnand %p798_p8, %p792_p5 }
  0x16   :  { %802 = shalt.err (!%p799_p9)
}
  0x17   :  { %s811_s22 = smov 256   ;;  %s812_s23 = smov 16  }
  0x18   :  { %33 = dma.hbm_to_vmem [thread:$0]  %s1080_s1, 4096, %s28_s20, [#allocation6], %s811_s22, %s811_s22, %s812_s23  }
  0x19   :  { %803 = dma.done.wait [#allocation4], 2048  }
  0x1a   :  { %804 = vsyncadd [#allocation4], 4294965248 }
  0x1b   :  { %805 = dma.done.wait [#allocation6], 4096  }
  0x1c   :  { %806 = vsyncadd [#allocation6], 4294963200  ;;  %v813_v0 = vmov 0.0   ;;  %v157_v1 = vld [vmem:[#allocation5 + $0xf8] sm:$0xff]  ;;  %v156_v2 = vld [vmem:[#allocation5 + $0xf0] sm:$0xff]  ;;  %v420_v49 = vlaneseq }
  0x1d   :  { %222 = vmatprep.mubr.f32.mxu0 %v813_v0  ;;  %270 = vmatprep.mubr.f32.mxu1 %v813_v0  ;;  %v155_v3 = vld [vmem:[#allocation5 + $0xe8] sm:$0xff]  ;;  %v154_v4 = vld [vmem:[#allocation5 + $0xe0] sm:$0xff]  ;;  %v153_v5 = vld [vmem:[#allocation5 + $0xd8] sm:$0xff] }
  0x1e   :  { %158 = vmatprep.subr.mxu0 %v157_v1  ;;  %660 = vmatprep.subr.mxu1 %v157_v1  ;;  %v152_v6 = vld [vmem:[#allocation5 + $0xd0] sm:$0xff]  ;;  %v151_v7 = vld [vmem:[#allocation5 + $0xc8] sm:$0xff]  ;;  %v150_v8 = vld [vmem:[#allocation5 + $0xc0] sm:$0xff]  ;;  %v421_v50 = vshrl.u32 %v420_v49, 7 }
  0x1f   :  { %159 = vmatpush1.msra.mxu0 %v156_v2  ;;  %676 = vmatpush1.msra.mxu1 %v156_v2  ;;  %v149_v9 = vld [vmem:[#allocation5 + $0xb8] sm:$0xff]  ;;  %v148_v10 = vld [vmem:[#allocation5 + $0xb0] sm:$0xff]  ;;  %v147_v11 = vld [vmem:[#allocation5 + $0xa8] sm:$0xff] }
  0x20   :  { %160 = vmatprep.subr.mxu0 %v155_v3  ;;  %661 = vmatprep.subr.mxu1 %v155_v3  ;;  %v146_v12 = vld [vmem:[#allocation5 + $0xa0] sm:$0xff]  ;;  %v145_v13 = vld [vmem:[#allocation5 + $0x98] sm:$0xff]  ;;  %v144_v14 = vld [vmem:[#allocation5 + $0x90] sm:$0xff]  ;;  %v422_v51 = vsub.s32 0, %v421_v50  ;;  %v426_v53 = vsub.s32 1, %v421_v50 }
  0x21   :  { %161 = vmatpush1.msra.mxu0 %v154_v4  ;;  %677 = vmatpush1.msra.mxu1 %v154_v4  ;;  %v143_v15 = vld [vmem:[#allocation5 + $0x88] sm:$0xff]  ;;  %v142_v16 = vld [vmem:[#allocation5 + $0x80] sm:$0xff]  ;;  %v141_v17 = vld [vmem:[#allocation5 + $0x78] sm:$0xff] }
  0x22   :  { %162 = vmatprep.subr.mxu0 %v153_v5  ;;  %662 = vmatprep.subr.mxu1 %v153_v5  ;;  %v140_v18 = vld [vmem:[#allocation5 + $0x70] sm:$0xff]  ;;  %v139_v19 = vld [vmem:[#allocation5 + $0x68] sm:$0xff]  ;;  %v138_v20 = vld [vmem:[#allocation5 + $0x60] sm:$0xff] }
  0x23   :  { %163 = vmatpush1.msra.mxu0 %v152_v6  ;;  %678 = vmatpush1.msra.mxu1 %v152_v6  ;;  %v137_v21 = vld [vmem:[#allocation5 + $0x58] sm:$0xff]  ;;  %v136_v22 = vld [vmem:[#allocation5 + $0x50] sm:$0xff]  ;;  %v135_v23 = vld [vmem:[#allocation5 + $0x48] sm:$0xff] }
  0x24   :  { %164 = vmatprep.subr.mxu0 %v151_v7  ;;  %663 = vmatprep.subr.mxu1 %v151_v7  ;;  %v134_v24 = vld [vmem:[#allocation5 + $0x40] sm:$0xff]  ;;  %v133_v25 = vld [vmem:[#allocation5 + $0x38] sm:$0xff]  ;;  %v132_v26 = vld [vmem:[#allocation5 + $0x30] sm:$0xff] }
  0x25   :  { %165 = vmatpush1.msra.mxu0 %v150_v8  ;;  %679 = vmatpush1.msra.mxu1 %v150_v8  ;;  %v131_v27 = vld [vmem:[#allocation5 + $0x28] sm:$0xff]  ;;  %v130_v28 = vld [vmem:[#allocation5 + $0x20] sm:$0xff]  ;;  %v129_v29 = vld [vmem:[#allocation5 + $0x18] sm:$0xff] }
  0x26   :  { %166 = vmatprep.subr.mxu0 %v149_v9  ;;  %664 = vmatprep.subr.mxu1 %v149_v9  ;;  %v128_v30 = vld [vmem:[#allocation5 + $0x10] sm:$0xff]  ;;  %v127_v31 = vld [vmem:[#allocation5 + $0x8] sm:$0xff]  ;;  %v126_v32 = vld [vmem:[#allocation5] sm:$0xff] }
  0x27   :  { %167 = vmatpush1.msra.mxu0 %v148_v10  ;;  %680 = vmatpush1.msra.mxu1 %v148_v10  ;;  %v110_v33 = vld [vmem:[#allocation3] sm:$0xff]  ;;  %v111_v35 = vld [vmem:[#allocation3 + $0x8] sm:$0xff]  ;;  %v112_v37 = vld [vmem:[#allocation3 + $0x10] sm:$0xff] }
  0x28   :  { %168 = vmatprep.subr.mxu0 %v147_v11  ;;  %665 = vmatprep.subr.mxu1 %v147_v11  ;;  %v118_v34 = vld [vmem:[#allocation3 + $0x40] sm:$0xff]  ;;  %v119_v36 = vld [vmem:[#allocation3 + $0x48] sm:$0xff]  ;;  %v120_v38 = vld [vmem:[#allocation3 + $0x50] sm:$0xff] }
  0x29   :  { %169 = vmatpush1.msra.mxu0 %v146_v12  ;;  %681 = vmatpush1.msra.mxu1 %v146_v12  ;;  %v113_v39 = vld [vmem:[#allocation3 + $0x18] sm:$0xff]  ;;  %v114_v41 = vld [vmem:[#allocation3 + $0x20] sm:$0xff]  ;;  %v115_v43 = vld [vmem:[#allocation3 + $0x28] sm:$0xff] }
  0x2a   :  { %170 = vmatprep.subr.mxu0 %v145_v13  ;;  %666 = vmatprep.subr.mxu1 %v145_v13  ;;  %v121_v40 = vld [vmem:[#allocation3 + $0x58] sm:$0xff]  ;;  %v122_v42 = vld [vmem:[#allocation3 + $0x60] sm:$0xff]  ;;  %v123_v44 = vld [vmem:[#allocation3 + $0x68] sm:$0xff] }
  0x2b   :  { %171 = vmatpush1.msra.mxu0 %v144_v14  ;;  %682 = vmatpush1.msra.mxu1 %v144_v14  ;;  %v116_v45 = vld [vmem:[#allocation3 + $0x30] sm:$0xff]  ;;  %v117_v47 = vld [vmem:[#allocation3 + $0x38] sm:$0xff]  ;;  %v418_v52 = vld [vmem:[%s1081_s2] sm:$0x3] }
  0x2c   :  { %172 = vmatprep.subr.mxu0 %v143_v15  ;;  %667 = vmatprep.subr.mxu1 %v143_v15  ;;  %v124_v46 = vld [vmem:[#allocation3 + $0x70] sm:$0xff]  ;;  %v125_v48 = vld [vmem:[#allocation3 + $0x78] sm:$0xff]  ;;  %v859_v54 = vrot.slane %v418_v52, %v422_v51  ;;  %v861_v57 = vrot.slane %v418_v52, %v426_v53 }
  0x2d   :  { %173 = vmatpush1.msra.mxu0 %v142_v16  ;;  %683 = vmatpush1.msra.mxu1 %v142_v16 }
  0x2e   :  { %174 = vmatprep.subr.mxu0 %v141_v17  ;;  %668 = vmatprep.subr.mxu1 %v141_v17 }
  0x2f   :  { %175 = vmatpush1.msra.mxu0 %v140_v18  ;;  %684 = vmatpush1.msra.mxu1 %v140_v18 }
  0x30   :  { %176 = vmatprep.subr.mxu0 %v139_v19  ;;  %669 = vmatprep.subr.mxu1 %v139_v19 }
  0x31   :  { %177 = vmatpush1.msra.mxu0 %v138_v20  ;;  %685 = vmatpush1.msra.mxu1 %v138_v20 }
  0x32   :  { %178 = vmatprep.subr.mxu0 %v137_v21  ;;  %670 = vmatprep.subr.mxu1 %v137_v21 }
  0x33   :  { %179 = vmatpush1.msra.mxu0 %v136_v22  ;;  %686 = vmatpush1.msra.mxu1 %v136_v22 }
  0x34   :  { %180 = vmatprep.subr.mxu0 %v135_v23  ;;  %671 = vmatprep.subr.mxu1 %v135_v23 }
  0x35   :  { %181 = vmatpush1.msra.mxu0 %v134_v24  ;;  %687 = vmatpush1.msra.mxu1 %v134_v24 }
  0x36   :  { %182 = vmatprep.subr.mxu0 %v133_v25  ;;  %672 = vmatprep.subr.mxu1 %v133_v25 }
  0x37   :  { %183 = vmatpush1.msra.mxu0 %v132_v26  ;;  %688 = vmatpush1.msra.mxu1 %v132_v26 }
  0x38   :  { %184 = vmatprep.subr.mxu0 %v131_v27  ;;  %673 = vmatprep.subr.mxu1 %v131_v27 }
  0x39   :  { %185 = vmatpush1.msra.mxu0 %v130_v28  ;;  %689 = vmatpush1.msra.mxu1 %v130_v28 }
  0x3a   :  { %186 = vmatprep.subr.mxu0 %v129_v29  ;;  %674 = vmatprep.subr.mxu1 %v129_v29 }
  0x3b   :  { %187 = vmatpush1.msra.mxu0 %v128_v30  ;;  %690 = vmatpush1.msra.mxu1 %v128_v30 }
  0x3c   :  { %188 = vmatprep.subr.mxu0 %v127_v31  ;;  %675 = vmatprep.subr.mxu1 %v127_v31 }
  0x3d   :  { %189 = vmatpush1.msra.mxu0 %v126_v32  ;;  %691 = vmatpush1.msra.mxu1 %v126_v32 }
  0x3e   :  { %223 = vmatmul.mubr.f32.vlgmr.msra.gmra.mxu0 %v110_v33  ;;  %271 = vmatmul.mubr.f32.vlgmr.msra.gmra.mxu1 %v118_v34 }
  0x3f   :  { %228 = vmatprep.mubr.f32.mxu0 %v813_v0  ;;  %276 = vmatprep.mubr.f32.mxu1 %v813_v0 }
  0x42   :  { %229 = vmatmul.mubr.f32.gmra.mxu0 %v111_v35  ;;  %277 = vmatmul.mubr.f32.gmra.mxu1 %v119_v36 }
  0x43   :  { %234 = vmatprep.mubr.f32.mxu0 %v813_v0  ;;  %282 = vmatprep.mubr.f32.mxu1 %v813_v0 }
  0x46   :  { %235 = vmatmul.mubr.f32.gmra.mxu0 %v112_v37  ;;  %283 = vmatmul.mubr.f32.gmra.mxu1 %v120_v38 }
  0x47   :  { %240 = vmatprep.mubr.f32.mxu0 %v813_v0  ;;  %288 = vmatprep.mubr.f32.mxu1 %v813_v0 }
  0x4a   :  { %241 = vmatmul.mubr.f32.gmra.mxu0 %v113_v39  ;;  %289 = vmatmul.mubr.f32.gmra.mxu1 %v121_v40 }
  0x4b   :  { %246 = vmatprep.mubr.f32.mxu0 %v813_v0  ;;  %294 = vmatprep.mubr.f32.mxu1 %v813_v0 }
  0x4e   :  { %247 = vmatmul.mubr.f32.gmra.mxu0 %v114_v41  ;;  %295 = vmatmul.mubr.f32.gmra.mxu1 %v122_v42 }
  0x4f   :  { %252 = vmatprep.mubr.f32.mxu0 %v813_v0  ;;  %300 = vmatprep.mubr.f32.mxu1 %v813_v0 }
  0x52   :  { %253 = vmatmul.mubr.f32.gmra.mxu0 %v115_v43  ;;  %301 = vmatmul.mubr.f32.gmra.mxu1 %v123_v44 }
  0x53   :  { %258 = vmatprep.mubr.f32.mxu0 %v813_v0  ;;  %306 = vmatprep.mubr.f32.mxu1 %v813_v0 }
  0x56   :  { %259 = vmatmul.mubr.f32.gmra.mxu0 %v116_v45  ;;  %307 = vmatmul.mubr.f32.gmra.mxu1 %v124_v46 }
  0x57   :  { %264 = vmatprep.mubr.f32.mxu0 %v813_v0  ;;  %312 = vmatprep.mubr.f32.mxu1 %v813_v0 }
  0x5a   :  { %265 = vmatmul.mubr.f32.gmra.mxu0 %v117_v47  ;;  %313 = vmatmul.mubr.f32.gmra.mxu1 %v125_v48 }
  0xfe   :  { %v224_v55 = vpop.f32.mrf.mxu0  ;;  %v272_v56 = vpop.f32.mrf.mxu1 }
  0xff   :  { %v430_v58 = vadd.f32 %v859_v54, %v224_v55  ;;  %v446_v59 = vadd.f32 %v859_v54, %v272_v56 }
 0x100   :  { %v226_v60 = vpop.f32.mrf.mxu0  ;;  %v274_v61 = vpop.f32.mrf.mxu1 }
 0x101   :  { %v494_v62 = vmul.f32 0.70710856, %v430_v58  ;;  %v510_v63 = vmul.f32 0.70710856, %v446_v59  ;;  %v431_v0 = vadd.f32 %v861_v57, %v226_v60  ;;  %v447_v1 = vadd.f32 %v861_v57, %v274_v61 }
 0x102   :  { %v230_v2 = vpop.f32.mrf.mxu0  ;;  %v278_v3 = vpop.f32.mrf.mxu1  ;;  %v462_v33 = vmul.f32 0.5, %v430_v58  ;;  %v478_v34 = vmul.f32 0.5, %v446_v59 }
 0x103   :  { %699 = verf.f32 %v494_v62  ;;  %v432_v4 = vadd.f32 %v859_v54, %v230_v2  ;;  %v448_v5 = vadd.f32 %v859_v54, %v278_v3  ;;  %v495_v6 = vmul.f32 0.70710856, %v431_v0 }
 0x104   :  { %701 = verf.f32 %v510_v63  ;;  %v232_v7 = vpop.f32.mrf.mxu0  ;;  %v280_v8 = vpop.f32.mrf.mxu1  ;;  %v511_v9 = vmul.f32 0.70710856, %v447_v1  ;;  %v463_v36 = vmul.f32 0.5, %v431_v0  ;;  %v479_v45 = vmul.f32 0.5, %v447_v1 }
 0x105   :  { %v496_v10 = vmul.f32 0.70710856, %v432_v4  ;;  %703 = verf.f32 %v495_v6  ;;  %v512_v11 = vmul.f32 0.70710856, %v448_v5  ;;  %v433_v12 = vadd.f32 %v861_v57, %v232_v7 }
 0x106   :  { %v449_v13 = vadd.f32 %v861_v57, %v280_v8  ;;  %v236_v14 = vpop.f32.mrf.mxu0  ;;  %v284_v15 = vpop.f32.mrf.mxu1  ;;  %705 = verf.f32 %v511_v9  ;;  %v464_v46 = vmul.f32 0.5, %v432_v4  ;;  %v480_v52 = vmul.f32 0.5, %v448_v5 }
 0x107   :  { %v434_v16 = vadd.f32 %v859_v54, %v236_v14  ;;  %v873_v17 = vadd.f32 %v859_v54, %v284_v15  ;;  %707 = verf.f32 %v496_v10  ;;  %v497_v18 = vmul.f32 0.70710856, %v433_v12 }
 0x108   :  { %v238_v19 = vpop.f32.mrf.mxu0  ;;  %v286_v20 = vpop.f32.mrf.mxu1  ;;  %709 = verf.f32 %v512_v11  ;;  %v513_v21 = vmul.f32 0.70710856, %v449_v13  ;;  %v465_v56 = vmul.f32 0.5, %v433_v12  ;;  %v481_v58 = vmul.f32 0.5, %v449_v13 }
 0x109   :  { %v498_v22 = vmul.f32 0.70710856, %v434_v16  ;;  %711 = verf.f32 %v497_v18  ;;  %v514_v23 = vmul.f32 0.70710856, %v873_v17  ;;  %v877_v24 = vadd.f32 %v861_v57, %v238_v19 }
 0x10a   :  { %v242_v25 = vpop.f32.mrf.mxu0  ;;  %v290_v26 = vpop.f32.mrf.mxu1  ;;  %713 = verf.f32 %v513_v21  ;;  %v880_v27 = vadd.f32 %v861_v57, %v286_v20  ;;  %v466_v63 = vmul.f32 0.5, %v434_v16  ;;  %v482_v19 = vmul.f32 0.5, %v873_v17 }
 0x10b   :  { %v883_v28 = vadd.f32 %v859_v54, %v242_v25  ;;  %v886_v29 = vadd.f32 %v859_v54, %v290_v26  ;;  %715 = verf.f32 %v498_v22  ;;  %v499_v30 = vmul.f32 0.70710856, %v877_v24 }
 0x10c   :  { %v244_v31 = vpop.f32.mrf.mxu0  ;;  %v292_v32 = vpop.f32.mrf.mxu1  ;;  %717 = verf.f32 %v514_v23  ;;  %v515_v35 = vmul.f32 0.70710856, %v880_v27 }
 0x10d   :  { %719 = verf.f32 %v499_v30  ;;  %v500_v37 = vmul.f32 0.70710856, %v883_v28  ;;  %v516_v38 = vmul.f32 0.70710856, %v886_v29  ;;  %v893_v41 = vadd.f32 %v861_v57, %v244_v31 }
 0x10e   :  { %v248_v39 = vpop.f32.mrf.mxu0  ;;  %v296_v40 = vpop.f32.mrf.mxu1  ;;  %721 = verf.f32 %v515_v35  ;;  %v896_v42 = vadd.f32 %v861_v57, %v292_v32  ;;  %v467_v30 = vmul.f32 0.5, %v877_v24 }
 0x10f   :  { %v899_v43 = vadd.f32 %v859_v54, %v248_v39  ;;  %723 = verf.f32 %v500_v37  ;;  %v902_v47 = vadd.f32 %v859_v54, %v296_v40  ;;  %v501_v53 = vmul.f32 0.70710856, %v893_v41 }
 0x110   :  { %v700_v44 = vpop.eup %699  ;;  %v250_v48 = vpop.f32.mrf.mxu0  ;;  %725 = verf.f32 %v516_v38  ;;  %v517_v59 = vmul.f32 0.70710856, %v896_v42 }
 0x111   :  { %v298_v49 = vpop.f32.mrf.mxu1  ;;  %v702_v50 = vpop.eup %701  ;;  %v558_v51 = vadd.f32 1.0, %v700_v44  ;;  %727 = verf.f32 %v501_v53  ;;  %v502_v0 = vmul.f32 0.70710856, %v899_v43  ;;  %v518_v5 = vmul.f32 0.70710856, %v902_v47 }
 0x112   :  { %v574_v55 = vadd.f32 1.0, %v702_v50  ;;  %v254_v60 = vpop.f32.mrf.mxu0  ;;  %v704_v61 = vpop.eup %703  ;;  %729 = verf.f32 %v517_v59  ;;  %v912_v9 = vadd.f32 %v861_v57, %v250_v48  ;;  %v915_v10 = vadd.f32 %v861_v57, %v298_v49 }
 0x113   :  { %v590_v62 = vmul.f32 %v558_v51, %v462_v33  ;;  %v302_v1 = vpop.f32.mrf.mxu1  ;;  %v706_v2 = vpop.eup %705  ;;  %v559_v4 = vadd.f32 1.0, %v704_v61  ;;  %731 = verf.f32 %v502_v0  ;;  %v921_v14 = vadd.f32 %v859_v54, %v254_v60 }
 0x114   :  { %v606_v3 = vmul.f32 %v574_v55, %v478_v34  ;;  %v256_v6 = vpop.f32.mrf.mxu0  ;;  %v708_v7 = vpop.eup %707  ;;  %v575_v8 = vadd.f32 1.0, %v706_v2  ;;  %733 = verf.f32 %v518_v5  ;;  %v503_v20 = vmul.f32 0.70710856, %v912_v9 }
 0x115   :  { %622 = vst [vmem:[%s1082_s3] sm:$0xff] %v590_v62  ;;  %v710_v11 = vpop.eup %709  ;;  %v591_v12 = vmul.f32 %v559_v4, %v463_v36  ;;  %v560_v13 = vadd.f32 1.0, %v708_v7  ;;  %v304_v21 = vpop.f32.mrf.mxu1  ;;  %v519_v31 = vmul.f32 0.70710856, %v915_v10  ;;  %v483_v34 = vmul.f32 0.5, %v880_v27 }
 0x116   :  { %638 = vst [vmem:[%s1082_s3 + $0x80] sm:$0xff] %v606_v3  ;;  %v712_v15 = vpop.eup %711  ;;  %v607_v16 = vmul.f32 %v575_v8, %v479_v45  ;;  %v576_v18 = vadd.f32 1.0, %v710_v11  ;;  %v260_v22 = vpop.f32.mrf.mxu0  ;;  %735 = verf.f32 %v503_v20  ;;  %v504_v24 = vmul.f32 0.70710856, %v921_v14 }
 0x117   :  { %v714_v23 = vpop.eup %713  ;;  %623 = vst [vmem:[%s1082_s3 + $0x8] sm:$0xff] %v591_v12  ;;  %v592_v25 = vmul.f32 %v560_v13, %v464_v46  ;;  %v561_v26 = vadd.f32 1.0, %v712_v15  ;;  %737 = verf.f32 %v519_v31  ;;  %v942_v27 = vadd.f32 %v859_v54, %v302_v1  ;;  %v308_v45 = vpop.f32.mrf.mxu1 }
 0x118   :  { %v716_v32 = vpop.eup %715  ;;  %639 = vst [vmem:[%s1082_s3 + $0x88] sm:$0xff] %v607_v16  ;;  %v608_v17 = vmul.f32 %v576_v18, %v480_v52  ;;  %v577_v33 = vadd.f32 1.0, %v714_v23  ;;  %v945_v44 = vadd.f32 %v861_v57, %v256_v6  ;;  %v262_v46 = vpop.f32.mrf.mxu0  ;;  %739 = verf.f32 %v504_v24 }
 0x119   :  { %v718_v35 = vpop.eup %717  ;;  %624 = vst [vmem:[%s1082_s3 + $0x10] sm:$0xff] %v592_v25  ;;  %v593_v36 = vmul.f32 %v561_v26, %v465_v56  ;;  %v562_v37 = vadd.f32 1.0, %v716_v32  ;;  %v951_v51 = vadd.f32 %v861_v57, %v304_v21  ;;  %v468_v56 = vmul.f32 0.5, %v883_v28  ;;  %v310_v2 = vpop.f32.mrf.mxu1 }
 0x11a   :  { %v720_v38 = vpop.eup %719  ;;  %640 = vst [vmem:[%s1082_s3 + $0x90] sm:$0xff] %v608_v17  ;;  %v609_v39 = vmul.f32 %v577_v33, %v481_v58  ;;  %v578_v40 = vadd.f32 1.0, %v718_v35  ;;  %v520_v58 = vmul.f32 0.70710856, %v942_v27  ;;  %v484_v62 = vmul.f32 0.5, %v886_v29  ;;  %v266_v3 = vpop.f32.mrf.mxu0 }
 0x11b   :  { %v722_v48 = vpop.eup %721  ;;  %625 = vst [vmem:[%s1082_s3 + $0x18] sm:$0xff] %v593_v36  ;;  %v594_v49 = vmul.f32 %v562_v37, %v466_v63  ;;  %v563_v50 = vadd.f32 1.0, %v720_v38  ;;  %v505_v63 = vmul.f32 0.70710856, %v945_v44  ;;  %v469_v28 = vmul.f32 0.5, %v893_v41  ;;  %v314_v25 = vpop.f32.mrf.mxu1 }
 0x11c   :  { %v724_v52 = vpop.eup %723  ;;  %641 = vst [vmem:[%s1082_s3 + $0x98] sm:$0xff] %v609_v39  ;;  %v610_v53 = vmul.f32 %v578_v40, %v482_v19  ;;  %v579_v55 = vadd.f32 1.0, %v722_v48  ;;  %741 = verf.f32 %v520_v58  ;;  %v521_v29 = vmul.f32 0.70710856, %v951_v51  ;;  %v268_v26 = vpop.f32.mrf.mxu0 }
 0x11d   :  { %v726_v59 = vpop.eup %725  ;;  %626 = vst [vmem:[%s1082_s3 + $0x20] sm:$0xff] %v594_v49  ;;  %v595_v60 = vmul.f32 %v563_v50, %v467_v30  ;;  %v564_v61 = vadd.f32 1.0, %v724_v52  ;;  %743 = verf.f32 %v505_v63  ;;  %v972_v6 = vadd.f32 %v859_v54, %v260_v22 }
 0x11e   :  { %642 = vst [vmem:[%s1082_s3 + $0xa0] sm:$0xff] %v610_v53  ;;  %v611_v0 = vmul.f32 %v579_v55, %v483_v34  ;;  %v580_v1 = vadd.f32 1.0, %v726_v59  ;;  %v728_v4 = vpop.eup %727  ;;  %v978_v11 = vadd.f32 %v859_v54, %v308_v45  ;;  %v981_v12 = vadd.f32 %v861_v57, %v262_v46  ;;  %v316_v46 = vpop.f32.mrf.mxu1 }
 0x11f   :  { %627 = vst [vmem:[%s1082_s3 + $0x28] sm:$0xff] %v595_v60  ;;  %v596_v5 = vmul.f32 %v564_v61, %v468_v56  ;;  %v730_v7 = vpop.eup %729  ;;  %v565_v8 = vadd.f32 1.0, %v728_v4  ;;  %v485_v15 = vmul.f32 0.5, %v896_v42  ;;  %745 = verf.f32 %v521_v29 }
 0x120   :  { %643 = vst [vmem:[%s1082_s3 + $0xa8] sm:$0xff] %v611_v0  ;;  %v612_v41 = vmul.f32 %v580_v1, %v484_v62  ;;  %v732_v13 = vpop.eup %731  ;;  %v581_v16 = vadd.f32 1.0, %v730_v7  ;;  %v506_v18 = vmul.f32 0.70710856, %v972_v6  ;;  %v470_v21 = vmul.f32 0.5, %v899_v43 }
 0x121   :  { %628 = vst [vmem:[%s1082_s3 + $0x30] sm:$0xff] %v596_v5  ;;  %v734_v19 = vpop.eup %733  ;;  %v597_v20 = vmul.f32 %v565_v8, %v469_v28  ;;  %v566_v22 = vadd.f32 1.0, %v732_v13  ;;  %v522_v23 = vmul.f32 0.70710856, %v978_v11  ;;  %v486_v42 = vmul.f32 0.5, %v902_v47 }
 0x122   :  { %644 = vst [vmem:[%s1082_s3 + $0xb0] sm:$0xff] %v612_v41  ;;  %v613_v30 = vmul.f32 %v581_v16, %v485_v15  ;;  %v582_v31 = vadd.f32 1.0, %v734_v19  ;;  %747 = verf.f32 %v506_v18  ;;  %v507_v17 = vmul.f32 0.70710856, %v981_v12 }
 0x123   :  { %629 = vst [vmem:[%s1082_s3 + $0x38] sm:$0xff] %v597_v20  ;;  %v598_v32 = vmul.f32 %v566_v22, %v470_v21  ;;  %749 = verf.f32 %v522_v23  ;;  %v999_v43 = vadd.f32 %v861_v57, %v310_v2  ;;  %v736_v33 = vpop.eup %735  ;;  %v1005_v47 = vadd.f32 %v859_v54, %v266_v3 }
 0x124   :  { %645 = vst [vmem:[%s1082_s3 + $0xb8] sm:$0xff] %v613_v30  ;;  %v614_v34 = vmul.f32 %v582_v31, %v486_v42  ;;  %v1008_v35 = vadd.f32 %v859_v54, %v314_v25  ;;  %v1011_v36 = vadd.f32 %v861_v57, %v268_v26  ;;  %v738_v37 = vpop.eup %737  ;;  %v471_v24 = vmul.f32 0.5, %v912_v9 }
 0x125   :  { %630 = vst [vmem:[%s1082_s3 + $0x40] sm:$0xff] %v598_v32  ;;  %v567_v38 = vadd.f32 1.0, %v736_v33  ;;  %751 = verf.f32 %v507_v17  ;;  %v523_v39 = vmul.f32 0.70710856, %v999_v43  ;;  %v487_v54 = vmul.f32 0.5, %v915_v10  ;;  %v740_v48 = vpop.eup %739 }
 0x126   :  { %646 = vst [vmem:[%s1082_s3 + $0xc0] sm:$0xff] %v614_v34  ;;  %v583_v40 = vadd.f32 1.0, %v738_v37  ;;  %v508_v45 = vmul.f32 0.70710856, %v1005_v47  ;;  %v472_v50 = vmul.f32 0.5, %v921_v14  ;;  %v568_v53 = vadd.f32 1.0, %v740_v48 }
 0x127   :  { %v599_v49 = vmul.f32 %v567_v38, %v471_v24  ;;  %753 = verf.f32 %v523_v39  ;;  %v524_v9 = vmul.f32 0.70710856, %v1008_v35  ;;  %v509_v55 = vmul.f32 0.70710856, %v1011_v36 }
 0x128   :  { %v615_v52 = vmul.f32 %v583_v40, %v487_v54  ;;  %755 = verf.f32 %v508_v45  ;;  %v461_v10 = vadd.f32 %v861_v57, %v316_v46  ;;  %v600_v14 = vmul.f32 %v568_v53, %v472_v50 }
 0x129   :  { %631 = vst [vmem:[%s1082_s3 + $0x48] sm:$0xff] %v599_v49  ;;  %757 = verf.f32 %v524_v9  ;;  %v742_v56 = vpop.eup %741  ;;  %v488_v59 = vmul.f32 0.5, %v942_v27  ;;  %v473_v62 = vmul.f32 0.5, %v945_v44  ;;  %v489_v28 = vmul.f32 0.5, %v951_v51 }
 0x12a   :  { %647 = vst [vmem:[%s1082_s3 + $0xc8] sm:$0xff] %v615_v52  ;;  %759 = verf.f32 %v509_v55  ;;  %v744_v58 = vpop.eup %743  ;;  %v584_v60 = vadd.f32 1.0, %v742_v56  ;;  %v525_v61 = vmul.f32 0.70710856, %v461_v10  ;;  %632 = vst [vmem:[%s1082_s3 + $0x50] sm:$0xff] %v600_v14  ;;  %v474_v44 = vmul.f32 0.5, %v972_v6 }
 0x12b   :  { %v569_v63 = vadd.f32 1.0, %v744_v58  ;;  %v490_v29 = vmul.f32 0.5, %v978_v11  ;;  %v475_v13 = vmul.f32 0.5, %v981_v12  ;;  %v491_v18 = vmul.f32 0.5, %v999_v43 }
 0x12c   :  { %v746_v57 = vpop.eup %745  ;;  %v616_v0 = vmul.f32 %v584_v60, %v488_v59  ;;  %761 = verf.f32 %v525_v61  ;;  %v476_v21 = vmul.f32 0.5, %v1005_v47  ;;  %v492_v25 = vmul.f32 0.5, %v1008_v35 }
 0x12d   :  { %v601_v1 = vmul.f32 %v569_v63, %v473_v62  ;;  %v585_v2 = vadd.f32 1.0, %v746_v57  ;;  %v477_v42 = vmul.f32 0.5, %v1011_v36  ;;  %v493_v33 = vmul.f32 0.5, %v461_v10 }
 0x12e   :  { %648 = vst [vmem:[%s1082_s3 + $0xd0] sm:$0xff] %v616_v0 }
 0x12f   :  { %v748_v3 = vpop.eup %747  ;;  %633 = vst [vmem:[%s1082_s3 + $0x58] sm:$0xff] %v601_v1  ;;  %v617_v4 = vmul.f32 %v585_v2, %v489_v28 }
 0x130   :  { %v750_v27 = vpop.eup %749  ;;  %v570_v5 = vadd.f32 1.0, %v748_v3 }
 0x131   :  { %v586_v7 = vadd.f32 1.0, %v750_v27  ;;  %649 = vst [vmem:[%s1082_s3 + $0xd8] sm:$0xff] %v617_v4 }
 0x132   :  { %v752_v41 = vpop.eup %751  ;;  %v602_v51 = vmul.f32 %v570_v5, %v474_v44 }
 0x133   :  { %v618_v8 = vmul.f32 %v586_v7, %v490_v29  ;;  %v571_v15 = vadd.f32 1.0, %v752_v41 }
 0x134   :  { %v754_v16 = vpop.eup %753  ;;  %634 = vst [vmem:[%s1082_s3 + $0x60] sm:$0xff] %v602_v51 }
 0x135   :  { %v756_v6 = vpop.eup %755  ;;  %650 = vst [vmem:[%s1082_s3 + $0xe0] sm:$0xff] %v618_v8  ;;  %v603_v11 = vmul.f32 %v571_v15, %v475_v13  ;;  %v587_v19 = vadd.f32 1.0, %v754_v16 }
 0x136   :  { %v758_v20 = vpop.eup %757  ;;  %v572_v22 = vadd.f32 1.0, %v756_v6 }
 0x137   :  { %v760_v12 = vpop.eup %759  ;;  %635 = vst [vmem:[%s1082_s3 + $0x68] sm:$0xff] %v603_v11  ;;  %v619_v23 = vmul.f32 %v587_v19, %v491_v18  ;;  %v588_v26 = vadd.f32 1.0, %v758_v20 }
 0x138   :  { %v604_v30 = vmul.f32 %v572_v22, %v476_v21  ;;  %v573_v31 = vadd.f32 1.0, %v760_v12 }
 0x139   :  { %651 = vst [vmem:[%s1082_s3 + $0xe8] sm:$0xff] %v619_v23  ;;  %v620_v32 = vmul.f32 %v588_v26, %v492_v25  ;;  %v762_v17 = vpop.eup %761 }
 0x13a   :  { %636 = vst [vmem:[%s1082_s3 + $0x70] sm:$0xff] %v604_v30  ;;  %v605_v43 = vmul.f32 %v573_v31, %v477_v42  ;;  %v589_v34 = vadd.f32 1.0, %v762_v17 }
 0x13b   :  { %652 = vst [vmem:[%s1082_s3 + $0xf0] sm:$0xff] %v620_v32 }
 0x13c   :  { %637 = vst [vmem:[%s1082_s3 + $0x78] sm:$0xff] %v605_v43  ;;  %v621_v47 = vmul.f32 %v589_v34, %v493_v33 }
 0x13e   :  { %653 = vst [vmem:[%s1082_s3 + $0xf8] sm:$0xff] %v621_v47 }
 0x13f   :  { %658 = vsyncpa [#allocation4], 1 }
 0x140   :  { %659 = vsyncpa [#allocation6], 1 }

</bundles_post_ra>
